<compile_context>
chip_gen: v7x
topology: tpu7x:2x2x1
jax: 0.10.0
libtpu: 0.0.40
codegen_flags: <defaults>
</compile_context>

<pallas_src>
import math
from functools import partial

import jax
import jax.numpy as jnp
from jax.experimental import pallas as pl
from jax.experimental.pallas import tpu as pltpu


# ---------------------------------------------------------------------------
# helpers
# ---------------------------------------------------------------------------
def _pick_tile(dim, target, step=128):
    """Largest tile <= target that evenly divides `dim`.

    Prefers multiples of `step` (sublane/lane granularity); falls back to the
    full extent when no such divisor exists (still correct, just less
    pipelined).  Small test dims simply use the full extent.
    """
    if dim <= target:
        return dim
    if dim % target == 0:
        return target
    t = (target // step) * step
    while t >= step:
        if dim % t == 0:
            return t
        t -= step
    return dim


def _rotate_half(x):
    d = x.shape[-1]
    return jnp.concatenate([-x[..., d // 2:], x[..., : d // 2]], axis=-1)


def rope_tables(seq_len, dim):
    """cos/sin tables matching RotaryEmbedding (base = max_seq_length = 65536)."""
    inv_freq = 1.0 / (65536.0 ** (jnp.arange(0, dim, 2, dtype=jnp.float32) / dim))
    t = jnp.arange(seq_len, dtype=jnp.float32)
    freqs = jnp.outer(t, inv_freq)                   # (S, dim // 2)
    emb = jnp.concatenate([freqs, freqs], axis=-1)   # (S, dim)
    return jnp.cos(emb), jnp.sin(emb)


# ---------------------------------------------------------------------------
# linear (x @ W + b) kernel  --  used for fused QKV and the output projection
# ---------------------------------------------------------------------------
def _linear_kernel(x_ref, w_ref, b_ref, o_ref, acc_ref):
    k = pl.program_id(2)

    @pl.when(k == 0)
    def _():
        acc_ref[...] = jnp.zeros_like(acc_ref)

    acc_ref[...] += jnp.dot(x_ref[...], w_ref[...],
                            preferred_element_type=jnp.float32)

    @pl.when(k == pl.num_programs(2) - 1)
    def _():
        o_ref[...] = (acc_ref[...] + b_ref[...].astype(jnp.float32)
                      ).astype(o_ref.dtype)


def linear_pallas(x, w, b, *, tm=256, tn=256, tk=512):
    """x: [M, K] bf16, w: [K, N] (pre-transposed) bf16, b: [1, N] -> [M, N]."""
    M, K = x.shape
    K2, N = w.shape
    assert K == K2 and b.shape == (1, N)

    tm = _pick_tile(M, tm, step=8)
    tn = _pick_tile(N, tn, step=128)
    tk = _pick_tile(K, tk, step=128)
    grid = (M // tm, N // tn, K // tk)

    itemsize = jnp.dtype(x.dtype).itemsize
    cost = pl.CostEstimate(
        flops=int(2 * M * N * K),
        transcendentals=0,
        bytes_accessed=int((M * K + K * N + M * N + N) * itemsize))

    return pl.pallas_call(
        _linear_kernel,
        out_shape=jax.ShapeDtypeStruct((M, N), x.dtype),
        grid_spec=pltpu.PrefetchScalarGridSpec(
            num_scalar_prefetch=0,
            grid=grid,
            in_specs=[
                pl.BlockSpec((tm, tk), lambda i, j, k: (i, k)),   # x tile
                pl.BlockSpec((tk, tn), lambda i, j, k: (k, j)),   # W tile
                pl.BlockSpec((1, tn), lambda i, j, k: (0, j)),    # bias tile
            ],
            out_specs=pl.BlockSpec((tm, tn), lambda i, j, k: (i, j)),
            scratch_shapes=[pltpu.VMEM((tm, tn), jnp.float32)],
        ),
        compiler_params=pltpu.CompilerParams(
            dimension_semantics=("parallel", "parallel", "arbitrary")),
        cost_estimate=cost,
    )(x, w, b)


# ---------------------------------------------------------------------------
# flash-style attention kernel with fused RoPE (non-causal, no mask)
# ---------------------------------------------------------------------------
def _mha_rope_kernel(q_ref, k_ref, v_ref, cos_q_ref, sin_q_ref, cos_k_ref,
                     sin_k_ref, o_ref, qrot_ref, m_ref, l_ref, acc_ref, *,
                     scale):
    ki = pl.program_id(3)

    @pl.when(ki == 0)
    def _():
        # Rotate the q tile once per (b, h, q-tile) and keep it in scratch.
        q = q_ref[...]
        qrot_ref[...] = q * cos_q_ref[...] + _rotate_half(q) * sin_q_ref[...]
        m_ref[...] = jnp.full_like(m_ref, -jnp.inf)
        l_ref[...] = jnp.zeros_like(l_ref)
        acc_ref[...] = jnp.zeros_like(acc_ref)

    k = k_ref[...]
    k_rot = k * cos_k_ref[...] + _rotate_half(k) * sin_k_ref[...]

    # scores (tq, tk): bf16 MXU inputs, f32 accumulation, contract head dim.
    s = jax.lax.dot_general(
        qrot_ref[...], k_rot,
        dimension_numbers=(((1,), (1,)), ((), ())),
        preferred_element_type=jnp.float32) * scale

    m_prev = m_ref[...]
    m_new = jnp.maximum(m_prev, s.max(axis=-1, keepdims=True))
    alpha = jnp.exp(m_prev - m_new)
    p = jnp.exp(s - m_new)
    l_ref[...] = alpha * l_ref[...] + p.sum(axis=-1, keepdims=True)
    acc_ref[...] = alpha * acc_ref[...] + jnp.dot(
        p.astype(v_ref.dtype), v_ref[...], preferred_element_type=jnp.float32)
    m_ref[...] = m_new

    @pl.when(ki == pl.num_programs(3) - 1)
    def _():
        o_ref[...] = (acc_ref[...] * pl.reciprocal(l_ref[...], approx=True)
                      ).astype(o_ref.dtype)


def mha_rope_pallas(q, k, v, cos, sin, *, tq=256, tk=256):
    """q/k/v: [B, Nh, S, Dh] bf16; cos/sin: [S, Dh]. Returns [B, Nh, S, Dh]."""
    B, Nh, S, Dh = q.shape
    tq = _pick_tile(S, tq, step=8)
    tk = _pick_tile(S, tk, step=8)
    grid = (B, Nh, S // tq, S // tk)
    scale = 1.0 / math.sqrt(Dh)

    itemsize = jnp.dtype(q.dtype).itemsize
    cost = pl.CostEstimate(
        flops=int(4 * B * Nh * S * S * Dh),
        transcendentals=int(B * Nh * S * S),
        bytes_accessed=int((4 * B * Nh * S * Dh + 2 * S * Dh) * itemsize))

    kernel = partial(_mha_rope_kernel, scale=scale)

    return pl.pallas_call(
        kernel,
        out_shape=jax.ShapeDtypeStruct((B, Nh, S, Dh), q.dtype),
        grid_spec=pltpu.PrefetchScalarGridSpec(
            num_scalar_prefetch=0,
            grid=grid,
            in_specs=[
                pl.BlockSpec((None, None, tq, Dh),
                             lambda b, h, qi, ki: (b, h, qi, 0)),     # q
                pl.BlockSpec((None, None, tk, Dh),
                             lambda b, h, qi, ki: (b, h, ki, 0)),     # k
                pl.BlockSpec((None, None, tk, Dh),
                             lambda b, h, qi, ki: (b, h, ki, 0)),     # v
                pl.BlockSpec((tq, Dh), lambda b, h, qi, ki: (qi, 0)),  # cos (q)
                pl.BlockSpec((tq, Dh), lambda b, h, qi, ki: (qi, 0)),  # sin (q)
                pl.BlockSpec((tk, Dh), lambda b, h, qi, ki: (ki, 0)),  # cos (k)
                pl.BlockSpec((tk, Dh), lambda b, h, qi, ki: (ki, 0)),  # sin (k)
            ],
            out_specs=pl.BlockSpec((None, None, tq, Dh),
                                   lambda b, h, qi, ki: (b, h, qi, 0)),
            scratch_shapes=[
                pltpu.VMEM((tq, Dh), q.dtype),      # rotated q (reused over kv)
                pltpu.VMEM((tq, 1), jnp.float32),   # running max
                pltpu.VMEM((tq, 1), jnp.float32),   # running denominator
                pltpu.VMEM((tq, Dh), jnp.float32),  # output accumulator
            ],
        ),
        compiler_params=pltpu.CompilerParams(
            dimension_semantics=("parallel", "parallel", "parallel",
                                 "arbitrary")),
        cost_estimate=cost,
    )(q, k, v, cos, sin, cos, sin)


# ---------------------------------------------------------------------------
# full forward pass (mirrors Attention.forward with defaults)
# ---------------------------------------------------------------------------
@partial(jax.jit, static_argnames=("num_heads", "head_size"))
def attention_forward(input_embeds, wqkv_t, bqkv, wo_t, bo, cos, sin, *,
                      num_heads, head_size):
    # TODO(synk): attention_mask / is_causal=True branches of
    # F.scaled_dot_product_attention are not implemented (default path only).
    B, S, D = input_embeds.shape
    M = B * S
    proj = num_heads * head_size

    x2d = input_embeds.reshape(M, D)
    qkv = linear_pallas(x2d, wqkv_t, bqkv)                    # (M, 3*proj) bf16
    qkv = qkv.reshape(B, S, 3, num_heads, head_size)
    q = jnp.transpose(qkv[:, :, 0], (0, 2, 1, 3))             # (B, Nh, S, Dh)
    k = jnp.transpose(qkv[:, :, 1], (0, 2, 1, 3))
    v = jnp.transpose(qkv[:, :, 2], (0, 2, 1, 3))

    attn = mha_rope_pallas(q, k, v, cos[:S], sin[:S])         # (B, Nh, S, Dh)
    attn2d = jnp.transpose(attn, (0, 2, 1, 3)).reshape(M, proj)

    out = linear_pallas(attn2d, wo_t, bo)                     # (M, D)
    return out.reshape(B, S, D)


# ---------------------------------------------------------------------------
# parameters (mirrors the PyTorch module's __init__)
# ---------------------------------------------------------------------------
class AttentionParams:
    def __init__(self, key, hidden_states, num_heads, head_size):
        proj = num_heads * head_size
        kq, kk, kv, ko = jax.random.split(key, 4)
        std_qkv = 1.0 / math.sqrt(proj)
        std_o = 1.0 / math.sqrt(hidden_states)
        wq = jax.random.normal(kq, (proj, hidden_states), jnp.float32) * std_qkv
        wk = jax.random.normal(kk, (proj, hidden_states), jnp.float32) * std_qkv
        wv = jax.random.normal(kv, (proj, hidden_states), jnp.float32) * std_qkv
        wo = jax.random.normal(ko, (hidden_states, proj), jnp.float32) * std_o
        # Fuse Q/K/V into one [hidden, 3*proj] operand, pre-transposed once at
        # init so no per-call HBM transpose happens inside jit.
        self.wqkv_t = jnp.concatenate([wq, wk, wv], axis=0).T.astype(jnp.bfloat16)
        self.wo_t = wo.T.astype(jnp.bfloat16)
        self.bqkv = jnp.zeros((1, 3 * proj), jnp.bfloat16)
        self.bo = jnp.zeros((1, hidden_states), jnp.bfloat16)


# ---------------------------------------------------------------------------
# plain-JAX reference (mirrors the kernel's bf16 precision boundaries)
# ---------------------------------------------------------------------------
def _reference(x, params, cos, sin, num_heads, head_size):
    B, S, D = x.shape
    proj = num_heads * head_size
    f32 = jnp.float32

    qkv = (x.reshape(B * S, D).astype(f32) @ params.wqkv_t.astype(f32)
           + params.bqkv.astype(f32)).astype(jnp.bfloat16)
    qkv = qkv.reshape(B, S, 3, num_heads, head_size)
    q = jnp.transpose(qkv[:, :, 0], (0, 2, 1, 3))
    k = jnp.transpose(qkv[:, :, 1], (0, 2, 1, 3))
    v = jnp.transpose(qkv[:, :, 2], (0, 2, 1, 3))

    def rope(t):
        d = t.shape[-1]
        rot = jnp.concatenate([-t[..., d // 2:], t[..., : d // 2]], axis=-1)
        return t * cos + rot * sin

    q, k = rope(q), rope(k)
    scale = 1.0 / math.sqrt(head_size)
    s = jnp.einsum("bhqd,bhkd->bhqk", q.astype(f32), k.astype(f32)) * scale
    m = s.max(axis=-1, keepdims=True)
    p = jnp.exp(s - m)
    l = p.sum(axis=-1, keepdims=True)
    o = jnp.einsum("bhqk,bhkd->bhqd",
                   p.astype(jnp.bfloat16).astype(f32), v.astype(f32)) / l
    o = jnp.transpose(o, (0, 2, 1, 3)).reshape(B * S, proj).astype(jnp.bfloat16)
    out = (o.astype(f32) @ params.wo_t.astype(f32) + params.bo.astype(f32))
    return out.reshape(B, S, D).astype(jnp.bfloat16)


if __name__ == "__main__":
    key = jax.random.PRNGKey(0)
    kx, kp = jax.random.split(key)

    batch, seq = 2, 16
    hidden_states, num_heads, head_size = 64, 4, 16

    params = AttentionParams(kp, hidden_states, num_heads, head_size)
    x = jax.random.normal(kx, (batch, seq, hidden_states),
                          jnp.float32).astype(jnp.bfloat16)

    cos, sin = rope_tables(seq, head_size)
    cos = cos.astype(jnp.bfloat16)
    sin = sin.astype(jnp.bfloat16)

    out = attention_forward(x, params.wqkv_t, params.bqkv, params.wo_t,
                            params.bo, cos, sin,
                            num_heads=num_heads, head_size=head_size)
    out = jax.block_until_ready(out)

    assert out.shape == (batch, seq, hidden_states), out.shape
    assert out.dtype == jnp.bfloat16, out.dtype

    ref = _reference(x, params, cos, sin, num_heads, head_size)
    err = jnp.max(jnp.abs(out.astype(jnp.float32) - ref.astype(jnp.float32)))
    assert float(err) < 5e-2, float(err)

    print("KERNEL_OK")
</pallas_src>

<mosaic_0001>
module attributes {stable_mosaic.version = 11 : i64} {
  func.func @_linear_kernel(%arg0: i32, %arg1: i32, %arg2: i32, %arg3: memref<32x64xbf16, #tpu.memory_space<vmem>>, %arg4: memref<64x192xbf16, #tpu.memory_space<vmem>>, %arg5: memref<1x192xbf16, #tpu.memory_space<vmem>>, %arg6: memref<32x192xbf16, #tpu.memory_space<vmem>>, %arg7: memref<32x192xf32, #tpu.memory_space<vmem>>) attributes {dimension_semantics = [#tpu.dimension_semantics<parallel>, #tpu.dimension_semantics<parallel>, #tpu.dimension_semantics<arbitrary>], iteration_bounds = array<i64: 1, 1, 1>, scalar_prefetch = 0 : i64, scratch_operands = 1 : i64, tpu.core_type = #tpu.core_type<tc>, window_params = [{transform_indices = @transform_0, window_bounds = array<i64: 32, 64>}, {transform_indices = @transform_1, window_bounds = array<i64: 64, 192>}, {transform_indices = @transform_2, window_bounds = array<i64: 1, 192>}, {transform_indices = @transform_3, window_bounds = array<i64: 32, 192>}]} {
    %c0_i32 = arith.constant 0 : i32
    %0 = arith.cmpi eq, %arg2, %c0_i32 : i32
    %1 = arith.extui %0 : i1 to i32
    %c0_i32_0 = arith.constant 0 : i32
    %2 = arith.cmpi ne, %1, %c0_i32_0 : i32
    scf.if %2 {
      %cst_10 = arith.constant 0.000000e+00 : f32
      %12 = vector.broadcast %cst_10 : f32 to vector<32x192xf32>
      %c0_11 = arith.constant 0 : index
      %c0_12 = arith.constant 0 : index
      %13 = vector.load %arg7[%c0_11, %c0_12] : memref<32x192xf32, #tpu.memory_space<vmem>>, vector<32x192xf32>
      tpu.vector_store %arg7[%c0_11, %c0_12], %12 {strides = array<i32>} : memref<32x192xf32, #tpu.memory_space<vmem>>, vector<32x192xf32>,
    } else {
    }
    %c0 = arith.constant 0 : index
    %c0_1 = arith.constant 0 : index
    %3 = vector.load %arg7[%c0, %c0_1] : memref<32x192xf32, #tpu.memory_space<vmem>>, vector<32x192xf32>
    %c0_2 = arith.constant 0 : index
    %c0_3 = arith.constant 0 : index
    %4 = vector.load %arg3[%c0_2, %c0_3] : memref<32x64xbf16, #tpu.memory_space<vmem>>, vector<32x64xbf16>
    %c0_4 = arith.constant 0 : index
    %c0_5 = arith.constant 0 : index
    %5 = vector.load %arg4[%c0_4, %c0_5] : memref<64x192xbf16, #tpu.memory_space<vmem>>, vector<64x192xbf16>
    %cst = arith.constant dense<0.000000e+00> : vector<32x192xf32>
    %6 = tpu.matmul %4, %5, %cst {dimension_numbers = #tpu.dot_dimension_numbers<[1], [0], [0], [1], [0, 0, 1, 1], [], []>} : vector<32x64xbf16>, vector<64x192xbf16>, vector<32x192xf32> -> vector<32x192xf32>
    %7 = arith.addf %3, %6 : vector<32x192xf32>
    %c0_6 = arith.constant 0 : index
    %c0_7 = arith.constant 0 : index
    %8 = vector.load %arg7[%c0_6, %c0_7] : memref<32x192xf32, #tpu.memory_space<vmem>>, vector<32x192xf32>
    tpu.vector_store %arg7[%c0_6, %c0_7], %7 {strides = array<i32>} : memref<32x192xf32, #tpu.memory_space<vmem>>, vector<32x192xf32>,
    %c0_i32_8 = arith.constant 0 : i32
    %9 = arith.cmpi eq, %arg2, %c0_i32_8 : i32
    %10 = arith.extui %9 : i1 to i32
    %c0_i32_9 = arith.constant 0 : i32
    %11 = arith.cmpi ne, %10, %c0_i32_9 : i32
    scf.if %11 {
      %c0_10 = arith.constant 0 : index
      %c0_11 = arith.constant 0 : index
      %12 = vector.load %arg7[%c0_10, %c0_11] : memref<32x192xf32, #tpu.memory_space<vmem>>, vector<32x192xf32>
      %c0_12 = arith.constant 0 : index
      %c0_13 = arith.constant 0 : index
      %13 = vector.load %arg5[%c0_12, %c0_13] : memref<1x192xbf16, #tpu.memory_space<vmem>>, vector<1x192xbf16>
      %14 = arith.extf %13 : vector<1x192xbf16> to vector<1x192xf32>
      %15 = vector.broadcast %14 : vector<1x192xf32> to vector<32x192xf32>
      %16 = arith.addf %12, %15 : vector<32x192xf32>
      %17 = arith.truncf %16 : vector<32x192xf32> to vector<32x192xbf16>
      %c0_14 = arith.constant 0 : index
      %c0_15 = arith.constant 0 : index
      %18 = vector.load %arg6[%c0_14, %c0_15] : memref<32x192xbf16, #tpu.memory_space<vmem>>, vector<32x192xbf16>
      tpu.vector_store %arg6[%c0_14, %c0_15], %17 {strides = array<i32>} : memref<32x192xbf16, #tpu.memory_space<vmem>>, vector<32x192xbf16>,
    } else {
    }
    return
  }
  func.func @transform_0(%arg0: i32, %arg1: i32, %arg2: i32) -> (i32, i32) {
    %c0_i32 = arith.constant 0 : i32
    return %arg0, %arg2 : i32, i32
  }
  func.func @transform_1(%arg0: i32, %arg1: i32, %arg2: i32) -> (i32, i32) {
    %c0_i32 = arith.constant 0 : i32
    return %arg2, %arg1 : i32, i32
  }
  func.func @transform_2(%arg0: i32, %arg1: i32, %arg2: i32) -> (i32, i32) {
    %c0_i32 = arith.constant 0 : i32
    %c0_i32_0 = arith.constant 0 : i32
    return %c0_i32, %arg1 : i32, i32
  }
  func.func @transform_3(%arg0: i32, %arg1: i32, %arg2: i32) -> (i32, i32) {
    %c0_i32 = arith.constant 0 : i32
    return %arg0, %arg1 : i32, i32
  }
}

module attributes {stable_mosaic.version = 11 : i64} {
  func.func @_linear_kernel(%arg0: i32, %arg1: i32, %arg2: i32, %arg3: memref<32x64xbf16, #tpu.memory_space<vmem>>, %arg4: memref<64x64xbf16, #tpu.memory_space<vmem>>, %arg5: memref<1x64xbf16, #tpu.memory_space<vmem>>, %arg6: memref<32x64xbf16, #tpu.memory_space<vmem>>, %arg7: memref<32x64xf32, #tpu.memory_space<vmem>>) attributes {dimension_semantics = [#tpu.dimension_semantics<parallel>, #tpu.dimension_semantics<parallel>, #tpu.dimension_semantics<arbitrary>], iteration_bounds = array<i64: 1, 1, 1>, scalar_prefetch = 0 : i64, scratch_operands = 1 : i64, tpu.core_type = #tpu.core_type<tc>, window_params = [{transform_indices = @transform_0, window_bounds = array<i64: 32, 64>}, {transform_indices = @transform_1, window_bounds = array<i64: 64, 64>}, {transform_indices = @transform_2, window_bounds = array<i64: 1, 64>}, {transform_indices = @transform_3, window_bounds = array<i64: 32, 64>}]} {
    %c0_i32 = arith.constant 0 : i32
    %0 = arith.cmpi eq, %arg2, %c0_i32 : i32
    %1 = arith.extui %0 : i1 to i32
    %c0_i32_0 = arith.constant 0 : i32
    %2 = arith.cmpi ne, %1, %c0_i32_0 : i32
    scf.if %2 {
      %cst_10 = arith.constant 0.000000e+00 : f32
      %12 = vector.broadcast %cst_10 : f32 to vector<32x64xf32>
      %c0_11 = arith.constant 0 : index
      %c0_12 = arith.constant 0 : index
      %13 = vector.load %arg7[%c0_11, %c0_12] : memref<32x64xf32, #tpu.memory_space<vmem>>, vector<32x64xf32>
      tpu.vector_store %arg7[%c0_11, %c0_12], %12 {strides = array<i32>} : memref<32x64xf32, #tpu.memory_space<vmem>>, vector<32x64xf32>,
    } else {
    }
    %c0 = arith.constant 0 : index
    %c0_1 = arith.constant 0 : index
    %3 = vector.load %arg7[%c0, %c0_1] : memref<32x64xf32, #tpu.memory_space<vmem>>, vector<32x64xf32>
    %c0_2 = arith.constant 0 : index
    %c0_3 = arith.constant 0 : index
    %4 = vector.load %arg3[%c0_2, %c0_3] : memref<32x64xbf16, #tpu.memory_space<vmem>>, vector<32x64xbf16>
    %c0_4 = arith.constant 0 : index
    %c0_5 = arith.constant 0 : index
    %5 = vector.load %arg4[%c0_4, %c0_5] : memref<64x64xbf16, #tpu.memory_space<vmem>>, vector<64x64xbf16>
    %cst = arith.constant dense<0.000000e+00> : vector<32x64xf32>
    %6 = tpu.matmul %4, %5, %cst {dimension_numbers = #tpu.dot_dimension_numbers<[1], [0], [0], [1], [0, 0, 1, 1], [], []>} : vector<32x64xbf16>, vector<64x64xbf16>, vector<32x64xf32> -> vector<32x64xf32>
    %7 = arith.addf %3, %6 : vector<32x64xf32>
    %c0_6 = arith.constant 0 : index
    %c0_7 = arith.constant 0 : index
    %8 = vector.load %arg7[%c0_6, %c0_7] : memref<32x64xf32, #tpu.memory_space<vmem>>, vector<32x64xf32>
    tpu.vector_store %arg7[%c0_6, %c0_7], %7 {strides = array<i32>} : memref<32x64xf32, #tpu.memory_space<vmem>>, vector<32x64xf32>,
    %c0_i32_8 = arith.constant 0 : i32
    %9 = arith.cmpi eq, %arg2, %c0_i32_8 : i32
    %10 = arith.extui %9 : i1 to i32
    %c0_i32_9 = arith.constant 0 : i32
    %11 = arith.cmpi ne, %10, %c0_i32_9 : i32
    scf.if %11 {
      %c0_10 = arith.constant 0 : index
      %c0_11 = arith.constant 0 : index
      %12 = vector.load %arg7[%c0_10, %c0_11] : memref<32x64xf32, #tpu.memory_space<vmem>>, vector<32x64xf32>
      %c0_12 = arith.constant 0 : index
      %c0_13 = arith.constant 0 : index
      %13 = vector.load %arg5[%c0_12, %c0_13] : memref<1x64xbf16, #tpu.memory_space<vmem>>, vector<1x64xbf16>
      %14 = arith.extf %13 : vector<1x64xbf16> to vector<1x64xf32>
      %15 = vector.broadcast %14 : vector<1x64xf32> to vector<32x64xf32>
      %16 = arith.addf %12, %15 : vector<32x64xf32>
      %17 = arith.truncf %16 : vector<32x64xf32> to vector<32x64xbf16>
      %c0_14 = arith.constant 0 : index
      %c0_15 = arith.constant 0 : index
      %18 = vector.load %arg6[%c0_14, %c0_15] : memref<32x64xbf16, #tpu.memory_space<vmem>>, vector<32x64xbf16>
      tpu.vector_store %arg6[%c0_14, %c0_15], %17 {strides = array<i32>} : memref<32x64xbf16, #tpu.memory_space<vmem>>, vector<32x64xbf16>,
    } else {
    }
    return
  }
  func.func @transform_0(%arg0: i32, %arg1: i32, %arg2: i32) -> (i32, i32) {
    %c0_i32 = arith.constant 0 : i32
    return %arg0, %arg2 : i32, i32
  }
  func.func @transform_1(%arg0: i32, %arg1: i32, %arg2: i32) -> (i32, i32) {
    %c0_i32 = arith.constant 0 : i32
    return %arg2, %arg1 : i32, i32
  }
  func.func @transform_2(%arg0: i32, %arg1: i32, %arg2: i32) -> (i32, i32) {
    %c0_i32 = arith.constant 0 : i32
    %c0_i32_0 = arith.constant 0 : i32
    return %c0_i32, %arg1 : i32, i32
  }
  func.func @transform_3(%arg0: i32, %arg1: i32, %arg2: i32) -> (i32, i32) {
    %c0_i32 = arith.constant 0 : i32
    return %arg0, %arg1 : i32, i32
  }
}

module attributes {stable_mosaic.version = 11 : i64} {
  func.func @_mha_rope_kernel(%arg0: i32, %arg1: i32, %arg2: i32, %arg3: i32, %arg4: memref<1x1x16x16xbf16, #tpu.memory_space<vmem>>, %arg5: memref<1x1x16x16xbf16, #tpu.memory_space<vmem>>, %arg6: memref<1x1x16x16xbf16, #tpu.memory_space<vmem>>, %arg7: memref<16x16xbf16, #tpu.memory_space<vmem>>, %arg8: memref<16x16xbf16, #tpu.memory_space<vmem>>, %arg9: memref<16x16xbf16, #tpu.memory_space<vmem>>, %arg10: memref<16x16xbf16, #tpu.memory_space<vmem>>, %arg11: memref<1x1x16x16xbf16, #tpu.memory_space<vmem>>, %arg12: memref<16x16xbf16, #tpu.memory_space<vmem>>, %arg13: memref<16x1xf32, #tpu.memory_space<vmem>>, %arg14: memref<16x1xf32, #tpu.memory_space<vmem>>, %arg15: memref<16x16xf32, #tpu.memory_space<vmem>>) attributes {dimension_semantics = [#tpu.dimension_semantics<parallel>, #tpu.dimension_semantics<parallel>, #tpu.dimension_semantics<parallel>, #tpu.dimension_semantics<arbitrary>], iteration_bounds = array<i64: 2, 4, 1, 1>, scalar_prefetch = 0 : i64, scratch_operands = 4 : i64, tpu.core_type = #tpu.core_type<tc>, window_params = [{transform_indices = @transform_0, window_bounds = array<i64: 1, 1, 16, 16>}, {transform_indices = @transform_1, window_bounds = array<i64: 1, 1, 16, 16>}, {transform_indices = @transform_2, window_bounds = array<i64: 1, 1, 16, 16>}, {transform_indices = @transform_3, window_bounds = array<i64: 16, 16>}, {transform_indices = @transform_4, window_bounds = array<i64: 16, 16>}, {transform_indices = @transform_5, window_bounds = array<i64: 16, 16>}, {transform_indices = @transform_6, window_bounds = array<i64: 16, 16>}, {transform_indices = @transform_7, window_bounds = array<i64: 1, 1, 16, 16>}]} {
    %c0_i32 = arith.constant 0 : i32
    %0 = arith.cmpi eq, %arg3, %c0_i32 : i32
    %1 = arith.extui %0 : i1 to i32
    %c0_i32_0 = arith.constant 0 : i32
    %2 = arith.cmpi ne, %1, %c0_i32_0 : i32
    scf.if %2 {
      %c0_33 = arith.constant 0 : index
      %c0_34 = arith.constant 0 : index
      %c0_35 = arith.constant 0 : index
      %c0_36 = arith.constant 0 : index
      %47 = vector.load %arg4[%c0_33, %c0_34, %c0_35, %c0_36] : memref<1x1x16x16xbf16, #tpu.memory_space<vmem>>, vector<1x1x16x16xbf16>
      %48 = vector.shape_cast %47 : vector<1x1x16x16xbf16> to vector<16x16xbf16>
      %c0_37 = arith.constant 0 : index
      %c0_38 = arith.constant 0 : index
      %49 = vector.load %arg7[%c0_37, %c0_38] : memref<16x16xbf16, #tpu.memory_space<vmem>>, vector<16x16xbf16>
      %50 = arith.mulf %48, %49 : vector<16x16xbf16>
      %51 = vector.extract_strided_slice %48 {offsets = [0, 8], sizes = [16, 8], strides = [1, 1]} : vector<16x16xbf16> to vector<16x8xbf16>
      %cst_39 = arith.constant 0.000000e+00 : bf16
      %52 = vector.broadcast %cst_39 : bf16 to vector<16x8xbf16>
      %53 = arith.subf %52, %51 : vector<16x8xbf16>
      %54 = vector.extract_strided_slice %48 {offsets = [0, 0], sizes = [16, 8], strides = [1, 1]} : vector<16x16xbf16> to vector<16x8xbf16>
      %55 = tpu.concatenate %53, %54 in 1 : vector<16x8xbf16>, vector<16x8xbf16> -> vector<16x16xbf16>
      %c0_40 = arith.constant 0 : index
      %c0_41 = arith.constant 0 : index
      %56 = vector.load %arg8[%c0_40, %c0_41] : memref<16x16xbf16, #tpu.memory_space<vmem>>, vector<16x16xbf16>
      %57 = arith.mulf %55, %56 : vector<16x16xbf16>
      %58 = arith.addf %50, %57 : vector<16x16xbf16>
      %c0_42 = arith.constant 0 : index
      %c0_43 = arith.constant 0 : index
      %59 = vector.load %arg12[%c0_42, %c0_43] : memref<16x16xbf16, #tpu.memory_space<vmem>>, vector<16x16xbf16>
      tpu.vector_store %arg12[%c0_42, %c0_43], %58 {strides = array<i32>} : memref<16x16xbf16, #tpu.memory_space<vmem>>, vector<16x16xbf16>,
      %cst_44 = arith.constant 0xFF800000 : f32
      %60 = vector.broadcast %cst_44 : f32 to vector<16x1xf32>
      %c0_45 = arith.constant 0 : index
      %c0_46 = arith.constant 0 : index
      %61 = vector.load %arg13[%c0_45, %c0_46] : memref<16x1xf32, #tpu.memory_space<vmem>>, vector<16x1xf32>
      tpu.vector_store %arg13[%c0_45, %c0_46], %60 {strides = array<i32>} : memref<16x1xf32, #tpu.memory_space<vmem>>, vector<16x1xf32>,
      %cst_47 = arith.constant 0.000000e+00 : f32
      %62 = vector.broadcast %cst_47 : f32 to vector<16x1xf32>
      %c0_48 = arith.constant 0 : index
      %c0_49 = arith.constant 0 : index
      %63 = vector.load %arg14[%c0_48, %c0_49] : memref<16x1xf32, #tpu.memory_space<vmem>>, vector<16x1xf32>
      tpu.vector_store %arg14[%c0_48, %c0_49], %62 {strides = array<i32>} : memref<16x1xf32, #tpu.memory_space<vmem>>, vector<16x1xf32>,
      %cst_50 = arith.constant 0.000000e+00 : f32
      %64 = vector.broadcast %cst_50 : f32 to vector<16x16xf32>
      %c0_51 = arith.constant 0 : index
      %c0_52 = arith.constant 0 : index
      %65 = vector.load %arg15[%c0_51, %c0_52] : memref<16x16xf32, #tpu.memory_space<vmem>>, vector<16x16xf32>
      tpu.vector_store %arg15[%c0_51, %c0_52], %64 {strides = array<i32>} : memref<16x16xf32, #tpu.memory_space<vmem>>, vector<16x16xf32>,
    } else {
    }
    %c0 = arith.constant 0 : index
    %c0_1 = arith.constant 0 : index
    %c0_2 = arith.constant 0 : index
    %c0_3 = arith.constant 0 : index
    %3 = vector.load %arg5[%c0, %c0_1, %c0_2, %c0_3] : memref<1x1x16x16xbf16, #tpu.memory_space<vmem>>, vector<1x1x16x16xbf16>
    %4 = vector.shape_cast %3 : vector<1x1x16x16xbf16> to vector<16x16xbf16>
    %c0_4 = arith.constant 0 : index
    %c0_5 = arith.constant 0 : index
    %5 = vector.load %arg9[%c0_4, %c0_5] : memref<16x16xbf16, #tpu.memory_space<vmem>>, vector<16x16xbf16>
    %6 = arith.mulf %4, %5 : vector<16x16xbf16>
    %7 = vector.extract_strided_slice %4 {offsets = [0, 8], sizes = [16, 8], strides = [1, 1]} : vector<16x16xbf16> to vector<16x8xbf16>
    %cst = arith.constant 0.000000e+00 : bf16
    %8 = vector.broadcast %cst : bf16 to vector<16x8xbf16>
    %9 = arith.subf %8, %7 : vector<16x8xbf16>
    %10 = vector.extract_strided_slice %4 {offsets = [0, 0], sizes = [16, 8], strides = [1, 1]} : vector<16x16xbf16> to vector<16x8xbf16>
    %11 = tpu.concatenate %9, %10 in 1 : vector<16x8xbf16>, vector<16x8xbf16> -> vector<16x16xbf16>
    %c0_6 = arith.constant 0 : index
    %c0_7 = arith.constant 0 : index
    %12 = vector.load %arg10[%c0_6, %c0_7] : memref<16x16xbf16, #tpu.memory_space<vmem>>, vector<16x16xbf16>
    %13 = arith.mulf %11, %12 : vector<16x16xbf16>
    %14 = arith.addf %6, %13 : vector<16x16xbf16>
    %c0_8 = arith.constant 0 : index
    %c0_9 = arith.constant 0 : index
    %15 = vector.load %arg12[%c0_8, %c0_9] : memref<16x16xbf16, #tpu.memory_space<vmem>>, vector<16x16xbf16>
    %cst_10 = arith.constant dense<0.000000e+00> : vector<16x16xf32>
    %16 = tpu.matmul %15, %14, %cst_10 {dimension_numbers = #tpu.dot_dimension_numbers<[1], [1], [0], [0], [0, 0, 1, 0], [], []>} : vector<16x16xbf16>, vector<16x16xbf16>, vector<16x16xf32> -> vector<16x16xf32>
    %cst_11 = arith.constant 2.500000e-01 : f32
    %17 = vector.broadcast %cst_11 : f32 to vector<16x16xf32>
    %18 = arith.mulf %16, %17 : vector<16x16xf32>
    %c0_12 = arith.constant 0 : index
    %c0_13 = arith.constant 0 : index
    %19 = vector.load %arg13[%c0_12, %c0_13] : memref<16x1xf32, #tpu.memory_space<vmem>>, vector<16x1xf32>
    %cst_14 = arith.constant dense<0xFF800000> : vector<16xf32>
    %20 = vector.multi_reduction <maximumf>, %18, %cst_14 [1] : vector<16x16xf32> to vector<16xf32>
    %21 = vector.shape_cast %20 : vector<16xf32> to vector<16x1xf32>
    %22 = arith.maximumf %19, %21 : vector<16x1xf32>
    %23 = arith.subf %19, %22 : vector<16x1xf32>
    %24 = math.exp %23 : vector<16x1xf32>
    %25 = vector.broadcast %22 : vector<16x1xf32> to vector<16x16xf32>
    %26 = arith.subf %18, %25 : vector<16x16xf32>
    %27 = math.exp %26 : vector<16x16xf32>
    %c0_15 = arith.constant 0 : index
    %c0_16 = arith.constant 0 : index
    %28 = vector.load %arg14[%c0_15, %c0_16] : memref<16x1xf32, #tpu.memory_space<vmem>>, vector<16x1xf32>
    %29 = arith.mulf %24, %28 : vector<16x1xf32>
    %cst_17 = arith.constant dense<0.000000e+00> : vector<16xf32>
    %30 = vector.multi_reduction <add>, %27, %cst_17 [1] : vector<16x16xf32> to vector<16xf32>
    %31 = vector.shape_cast %30 : vector<16xf32> to vector<16x1xf32>
    %32 = arith.addf %29, %31 : vector<16x1xf32>
    %c0_18 = arith.constant 0 : index
    %c0_19 = arith.constant 0 : index
    %33 = vector.load %arg14[%c0_18, %c0_19] : memref<16x1xf32, #tpu.memory_space<vmem>>, vector<16x1xf32>
    tpu.vector_store %arg14[%c0_18, %c0_19], %32 {strides = array<i32>} : memref<16x1xf32, #tpu.memory_space<vmem>>, vector<16x1xf32>,
    %c0_20 = arith.constant 0 : index
    %c0_21 = arith.constant 0 : index
    %34 = vector.load %arg15[%c0_20, %c0_21] : memref<16x16xf32, #tpu.memory_space<vmem>>, vector<16x16xf32>
    %35 = vector.broadcast %24 : vector<16x1xf32> to vector<16x16xf32>
    %36 = arith.mulf %35, %34 : vector<16x16xf32>
    %37 = arith.truncf %27 : vector<16x16xf32> to vector<16x16xbf16>
    %c0_22 = arith.constant 0 : index
    %c0_23 = arith.constant 0 : index
    %c0_24 = arith.constant 0 : index
    %c0_25 = arith.constant 0 : index
    %38 = vector.load %arg6[%c0_22, %c0_23, %c0_24, %c0_25] : memref<1x1x16x16xbf16, #tpu.memory_space<vmem>>, vector<1x1x16x16xbf16>
    %39 = vector.shape_cast %38 : vector<1x1x16x16xbf16> to vector<16x16xbf16>
    %cst_26 = arith.constant dense<0.000000e+00> : vector<16x16xf32>
    %40 = tpu.matmul %37, %39, %cst_26 {dimension_numbers = #tpu.dot_dimension_numbers<[1], [0], [0], [1], [0, 0, 1, 1], [], []>} : vector<16x16xbf16>, vector<16x16xbf16>, vector<16x16xf32> -> vector<16x16xf32>
    %41 = arith.addf %36, %40 : vector<16x16xf32>
    %c0_27 = arith.constant 0 : index
    %c0_28 = arith.constant 0 : index
    %42 = vector.load %arg15[%c0_27, %c0_28] : memref<16x16xf32, #tpu.memory_space<vmem>>, vector<16x16xf32>
    tpu.vector_store %arg15[%c0_27, %c0_28], %41 {strides = array<i32>} : memref<16x16xf32, #tpu.memory_space<vmem>>, vector<16x16xf32>,
    %c0_29 = arith.constant 0 : index
    %c0_30 = arith.constant 0 : index
    %43 = vector.load %arg13[%c0_29, %c0_30] : memref<16x1xf32, #tpu.memory_space<vmem>>, vector<16x1xf32>
    tpu.vector_store %arg13[%c0_29, %c0_30], %22 {strides = array<i32>} : memref<16x1xf32, #tpu.memory_space<vmem>>, vector<16x1xf32>,
    %c0_i32_31 = arith.constant 0 : i32
    %44 = arith.cmpi eq, %arg3, %c0_i32_31 : i32
    %45 = arith.extui %44 : i1 to i32
    %c0_i32_32 = arith.constant 0 : i32
    %46 = arith.cmpi ne, %45, %c0_i32_32 : i32
    scf.if %46 {
      %c0_33 = arith.constant 0 : index
      %c0_34 = arith.constant 0 : index
      %47 = vector.load %arg15[%c0_33, %c0_34] : memref<16x16xf32, #tpu.memory_space<vmem>>, vector<16x16xf32>
      %c0_35 = arith.constant 0 : index
      %c0_36 = arith.constant 0 : index
      %48 = vector.load %arg14[%c0_35, %c0_36] : memref<16x1xf32, #tpu.memory_space<vmem>>, vector<16x1xf32>
      %49 = tpu.reciprocal %48 {approx = true} : vector<16x1xf32> -> vector<16x1xf32>
      %50 = vector.broadcast %49 : vector<16x1xf32> to vector<16x16xf32>
      %51 = arith.mulf %47, %50 : vector<16x16xf32>
      %52 = arith.truncf %51 : vector<16x16xf32> to vector<16x16xbf16>
      %c0_37 = arith.constant 0 : index
      %c0_38 = arith.constant 0 : index
      %c0_39 = arith.constant 0 : index
      %c0_40 = arith.constant 0 : index
      %53 = vector.load %arg11[%c0_37, %c0_38, %c0_39, %c0_40] : memref<1x1x16x16xbf16, #tpu.memory_space<vmem>>, vector<1x1x16x16xbf16>
      %54 = vector.shape_cast %53 : vector<1x1x16x16xbf16> to vector<16x16xbf16>
      %55 = vector.shape_cast %52 : vector<16x16xbf16> to vector<1x1x16x16xbf16>
      tpu.vector_store %arg11[%c0_37, %c0_38, %c0_39, %c0_40], %55 {strides = array<i32>} : memref<1x1x16x16xbf16, #tpu.memory_space<vmem>>, vector<1x1x16x16xbf16>,
    } else {
    }
    return
  }
  func.func @transform_0(%arg0: i32, %arg1: i32, %arg2: i32, %arg3: i32) -> (i32, i32, i32, i32) {
    %c0_i32 = arith.constant 0 : i32
    %c0_i32_0 = arith.constant 0 : i32
    return %arg0, %arg1, %arg2, %c0_i32 : i32, i32, i32, i32
  }
  func.func @transform_1(%arg0: i32, %arg1: i32, %arg2: i32, %arg3: i32) -> (i32, i32, i32, i32) {
    %c0_i32 = arith.constant 0 : i32
    %c0_i32_0 = arith.constant 0 : i32
    return %arg0, %arg1, %arg3, %c0_i32 : i32, i32, i32, i32
  }
  func.func @transform_2(%arg0: i32, %arg1: i32, %arg2: i32, %arg3: i32) -> (i32, i32, i32, i32) {
    %c0_i32 = arith.constant 0 : i32
    %c0_i32_0 = arith.constant 0 : i32
    return %arg0, %arg1, %arg3, %c0_i32 : i32, i32, i32, i32
  }
  func.func @transform_3(%arg0: i32, %arg1: i32, %arg2: i32, %arg3: i32) -> (i32, i32) {
    %c0_i32 = arith.constant 0 : i32
    %c0_i32_0 = arith.constant 0 : i32
    return %arg2, %c0_i32 : i32, i32
  }
  func.func @transform_4(%arg0: i32, %arg1: i32, %arg2: i32, %arg3: i32) -> (i32, i32) {
    %c0_i32 = arith.constant 0 : i32
    %c0_i32_0 = arith.constant 0 : i32
    return %arg2, %c0_i32 : i32, i32
  }
  func.func @transform_5(%arg0: i32, %arg1: i32, %arg2: i32, %arg3: i32) -> (i32, i32) {
    %c0_i32 = arith.constant 0 : i32
    %c0_i32_0 = arith.constant 0 : i32
    return %arg3, %c0_i32 : i32, i32
  }
  func.func @transform_6(%arg0: i32, %arg1: i32, %arg2: i32, %arg3: i32) -> (i32, i32) {
    %c0_i32 = arith.constant 0 : i32
    %c0_i32_0 = arith.constant 0 : i32
    return %arg3, %c0_i32 : i32, i32
  }
  func.func @transform_7(%arg0: i32, %arg1: i32, %arg2: i32, %arg3: i32) -> (i32, i32, i32, i32) {
    %c0_i32 = arith.constant 0 : i32
    %c0_i32_0 = arith.constant 0 : i32
    return %arg0, %arg1, %arg2, %c0_i32 : i32, i32, i32, i32
  }
}

</mosaic_0001>

<bundles_post_ra>
// kernel: attention_forward.3
= control target key start
LH: loop header
LB: loop body
LE: loop exit
PB: predicated region body
PF: predicated region fallthrough
CT: control target
= control target key end

     0   :  { %8 = vsyncpa [#allocation4], 0  ;;  %s454_s0 = inlined_call_operand.hbm [shape: bf16[32,64], index: 0, kind: input, shape index: {}]   ;;  %s455_s1 = inlined_call_operand.hbm [shape: bf16[64,192], index: 1, kind: input, shape index: {}]   ;;  %s456_s2 = inlined_call_operand.vmem [shape: bf16[1,192], index: 2, kind: input, shape index: {}]   ;;  %s457_s3 = inlined_call_operand.vmem [shape: bf16[32,192], index: 3, kind: output, shape index: {}]  }
   0x1   :  { %9 = vsyncpa [#allocation6], 0  ;;  %s377_s12 = smov [#allocation3]   ;;  %s329_s16 = scalar_lea.hbm %s454_s0, 256 }
   0x2   :  { %s15_s13 = sshll.u32 %s377_s12, 4  ;;  %p330_p0 = scmp.ne.s32.totalorder %s454_s0, %s329_s16  ;;  %s16_s13 = int_to_ptr.vmem [resolvable:$true] %s15_s13 }
   0x3   :  { %p333_p1 = scmp.lt.u32.totalorder %s329_s16, %s454_s0 }
   0x5   :  { %p335_p2 = pnand %p333_p1, %p330_p0 }
   0x7   :  { %338 = shalt.err (!%p335_p2)
}
   0x8   :  { %s339_s21 = scalar_lea.vmem %s16_s13, 256  ;;  %p344_p4 = scmp.lt.s32.totalorder %s16_s13, %s16_s13 }
   0x9   :  { %p340_p3 = scmp.ne.s32.totalorder %s16_s13, %s339_s21  ;;  %p345_p5 = scmp.lt.s32.totalorder %s339_s21, %s339_s21 }
   0xb   :  { %p346_p6 = por %p345_p5, %p344_p4 }
   0xd   :  { %p347_p7 = pnand %p346_p6, %p340_p3 }
   0xf   :  { %350 = shalt.err (!%p347_p7)
}
  0x10   :  { %s378_s22 = smov 64   ;;  %s379_s23 = smov 4  }
  0x11   :  { %21 = dma.hbm_to_vmem [thread:$0]  %s454_s0, 256, %s16_s13, [#allocation4], %s378_s22, %s378_s22, %s379_s23  }
  0x12   :  { %s380_s26 = smov [#allocation5]   ;;  %s351_s30 = scalar_lea.hbm %s455_s1, 1024 }
  0x13   :  { %s27_s27 = sshll.u32 %s380_s26, 4  ;;  %p352_p8 = scmp.ne.s32.totalorder %s455_s1, %s351_s30  ;;  %s28_s27 = int_to_ptr.vmem [resolvable:$true] %s27_s27 }
  0x14   :  { %p355_p9 = scmp.lt.u32.totalorder %s351_s30, %s455_s1 }
  0x16   :  { %p357_p10 = pnand %p355_p9, %p352_p8 }
  0x18   :  { %360 = shalt.err (!%p357_p10)
}
  0x19   :  { %s361_s8 = scalar_lea.vmem %s28_s27, 1024  ;;  %p366_p12 = scmp.lt.s32.totalorder %s28_s27, %s28_s27 }
  0x1a   :  { %p362_p11 = scmp.ne.s32.totalorder %s28_s27, %s361_s8  ;;  %p367_p13 = scmp.lt.s32.totalorder %s361_s8, %s361_s8 }
  0x1c   :  { %p368_p0 = por %p367_p13, %p366_p12 }
  0x1e   :  { %p369_p1 = pnand %p368_p0, %p362_p11 }
  0x20   :  { %372 = shalt.err (!%p369_p1)
}
  0x21   :  { %s381_s0 = smov 128   ;;  %s382_s9 = smov 8  }
  0x22   :  { %33 = dma.hbm_to_vmem [thread:$0]  %s455_s1, 1024, %s28_s27, [#allocation6], %s381_s0, %s381_s0, %s382_s9  }
  0x23   :  { %373 = dma.done.wait [#allocation4], 256  }
  0x24   :  { %374 = vsyncadd [#allocation4], 4294967040 }
  0x25   :  { %375 = dma.done.wait [#allocation6], 1024  }
  0x26   :  { %376 = vsyncadd [#allocation6], 4294966272  ;;  %vm48_vm0 = vcmask 523264   ;;  %v383_v0 = vmov 0   ;;  %v384_v1 = vmov 0.0   ;;  %v327_v10 = vld [vmem:[#allocation3] sm:$0xff]   ;;  %v216_v12 = vlaneseq }
  0x27   :  { %165 = vmatprep.mubr.bf16.mxu0 %v383_v0  ;;  %175 = vmatprep.mubr.bf16.mxu1 %v383_v0  ;;  %49 = vst.msk [vmem:[#allocation2 + $0x8] sm:$0xff] %vm48_vm0, %v384_v1  ;;  %51 = vst.msk [vmem:[#allocation2 + $0x18] sm:$0xff] %vm48_vm0, %v384_v1  ;;  %v315_v2 = vld [vmem:[#allocation5 + $0x4] ss:$8 sps:$4 sm:$0xff]   ;;  %v317_v3 = vld [vmem:[#allocation5] ss:$8 sps:$4 sm:$0xff]  }
  0x28   :  { %53 = vst.msk [vmem:[#allocation2 + $0x28] sm:$0xff] %vm48_vm0, %v384_v1  ;;  %55 = vst.msk [vmem:[#allocation2 + $0x38] sm:$0xff] %vm48_vm0, %v384_v1  ;;  %133 = vmatprep.subr.bf16.mxu0 %v315_v2  ;;  %299 = vmatprep.subr.bf16.mxu1 %v315_v2  ;;  %v318_v4 = vld [vmem:[#allocation5 + $0x14] ss:$8 sps:$4 sm:$0xff]   ;;  %v320_v5 = vld [vmem:[#allocation5 + $0x10] ss:$8 sps:$4 sm:$0xff]  }
  0x29   :  { %134 = vmatpush1.bf16.msra.mxu0 %v317_v3  ;;  %303 = vmatpush1.bf16.msra.mxu1 %v317_v3  ;;  %v321_v6 = vld [vmem:[#allocation5 + $0x24] ss:$8 sps:$4 sm:$0xff]   ;;  %v323_v7 = vld [vmem:[#allocation5 + $0x20] ss:$8 sps:$4 sm:$0xff]   ;;  %v324_v8 = vld [vmem:[#allocation5 + $0x34] ss:$8 sps:$4 sm:$0xff]  }
  0x2a   :  { %135 = vmatprep.subr.bf16.mxu0 %v318_v4  ;;  %300 = vmatprep.subr.bf16.mxu1 %v318_v4  ;;  %v326_v9 = vld [vmem:[#allocation5 + $0x30] ss:$8 sps:$4 sm:$0xff]   ;;  %v217_v13 = vshrl.u32 %v216_v12, 7  ;;  %vm266_vm1 = vcmask 1043456   ;;  %vm267_vm2 = vcmask 523268  }
  0x2b   :  { %v328_v11 = vld [vmem:[#allocation3 + $0x8] sm:$0xff]   ;;  %v213_v14 = vld [vmem:[%s456_s2] sm:$0x3]  ;;  %vm268_vm3 = vmor %vm267_vm2, %vm266_vm1 }
  0x2c   :  { %v214_v18 = vunpack.c.l.bf16 %v213_v14  ;;  %v218_v19 = vsub.s32 0, %v217_v13  ;;  %v222_v21 = vsub.s32 2, %v217_v13 }
  0x2d   :  { %136 = vmatpush1.bf16.msra.mxu0 %v320_v5  ;;  %304 = vmatpush1.bf16.msra.mxu1 %v320_v5 }
  0x2e   :  { %137 = vmatprep.subr.bf16.mxu0 %v321_v6  ;;  %301 = vmatprep.subr.bf16.mxu1 %v321_v6  ;;  %v57_v15 = vld [vmem:[#allocation2 + $0x8] sm:$0xff]  ;;  %v59_v24 = vld [vmem:[#allocation2 + $0x18] sm:$0xff]  ;;  %v219_v32 = vrot.slane %v214_v18, %v218_v19  ;;  %v223_v33 = vrot.slane %v214_v18, %v222_v21 }
  0x2f   :  { %v61_v16 = vld [vmem:[#allocation2 + $0x28] sm:$0xff]  ;;  %v63_v25 = vld [vmem:[#allocation2 + $0x38] sm:$0xff] }
  0x30   :  { %v229_v36 = vrot.slane %v219_v32, %v218_v19  ;;  %v233_v37 = vrot.slane %v223_v33, %v218_v19 }
  0x31   :  { %138 = vmatpush1.bf16.msra.mxu0 %v323_v7  ;;  %305 = vmatpush1.bf16.msra.mxu1 %v323_v7 }
  0x32   :  { %139 = vmatprep.subr.bf16.mxu0 %v324_v8  ;;  %302 = vmatprep.subr.bf16.mxu1 %v324_v8 }
  0x35   :  { %140 = vmatpush1.bf16.msra.mxu0 %v326_v9  ;;  %306 = vmatpush1.bf16.msra.mxu1 %v326_v9 }
  0x38   :  { %289 = vmatmul.mubr.msk.bf16.vlgmr.msra.gmra.mrb[0].mxu0 %vm48_vm0, %v327_v10  ;;  %290 = vmatmul.mubr.msk.bf16.vlgmr.msra.gmra.mrb[0].mxu1 %vm48_vm0, %v328_v11 }
 0x10b   :  { %v167_v17 = vpop.f32.mrb[0].mxu0  ;;  %v177_v20 = vpop.f32.mrb[0].mxu1 }
 0x10c   :  { %v169_v22 = vpop.f32.mrb[1].mxu0  ;;  %v179_v23 = vpop.f32.mrb[1].mxu1  ;;  %v234_v40 = vadd.f32 %v229_v36, %v167_v17  ;;  %v238_v41 = vadd.f32 %v229_v36, %v177_v20 }
 0x10d   :  { %v187_v26 = vadd.f32 %v169_v22, %v57_v15  ;;  %v191_v27 = vadd.f32 %v179_v23, %v61_v16  ;;  %v171_v28 = vpop.f32.mrb[2].mxu0  ;;  %v181_v29 = vpop.f32.mrb[2].mxu1 }
 0x10e   :  { %v173_v30 = vpop.f32.mrb[3].mxu0  ;;  %v183_v31 = vpop.f32.mrb[3].mxu1  ;;  %v236_v44 = vadd.f32 %v229_v36, %v171_v28  ;;  %v240_v45 = vadd.f32 %v229_v36, %v181_v29 }
 0x10f   :  { %195 = vst.msk [vmem:[#allocation2 + $0x8] sm:$0xff] %vm48_vm0, %v187_v26  ;;  %199 = vst.msk [vmem:[#allocation2 + $0x28] sm:$0xff] %vm48_vm0, %v191_v27  ;;  %v189_v34 = vadd.f32 %v173_v30, %v59_v24  ;;  %v193_v35 = vadd.f32 %v183_v31, %v63_v25 }
 0x111   :  { %197 = vst.msk [vmem:[#allocation2 + $0x18] sm:$0xff] %vm48_vm0, %v189_v34  ;;  %201 = vst.msk [vmem:[#allocation2 + $0x38] sm:$0xff] %vm48_vm0, %v193_v35 }
 0x116   :  { %v206_v38 = vld [vmem:[#allocation2 + $0x8] sm:$0xff] }
 0x117   :  { %v210_v39 = vld [vmem:[#allocation2 + $0x28] sm:$0xff]  ;;  %v235_v42 = vadd.f32 %v233_v37, %v206_v38 }
 0x118   :  { %v239_v43 = vadd.f32 %v233_v37, %v210_v39  ;;  %v208_v46 = vld [vmem:[#allocation2 + $0x18] sm:$0xff] }
 0x119   :  { %v212_v47 = vld [vmem:[#allocation2 + $0x38] sm:$0xff]  ;;  %v295_v48 = vpack.c.bf16 %v235_v42, %v234_v40  ;;  %v237_v50 = vadd.f32 %v233_v37, %v208_v46 }
 0x11a   :  { %v297_v49 = vpack.c.bf16 %v239_v43, %v238_v41  ;;  %v241_v51 = vadd.f32 %v233_v37, %v212_v47 }
 0x11b   :  { %269 = vst.msk [vmem:[%s457_s3] sm:$0xff] %vm268_vm3, %v295_v48  ;;  %v296_v52 = vpack.c.bf16 %v237_v50, %v236_v44 }
 0x11c   :  { %271 = vst.msk [vmem:[%s457_s3 + $0x10] sm:$0xff] %vm268_vm3, %v297_v49  ;;  %v298_v53 = vpack.c.bf16 %v241_v51, %v240_v45 }
 0x11d   :  { %270 = vst.msk [vmem:[%s457_s3 + $0x8] sm:$0xff] %vm268_vm3, %v296_v52 }
 0x11e   :  { %272 = vst.msk [vmem:[%s457_s3 + $0x18] sm:$0xff] %vm268_vm3, %v298_v53 }
 0x11f   :  { %277 = vsyncpa [#allocation4], 1 }
 0x120   :  { %278 = vsyncpa [#allocation6], 1 }

// kernel: attention_forward.5
= control target key start
LH: loop header
LB: loop body
LE: loop exit
PB: predicated region body
PF: predicated region fallthrough
CT: control target
= control target key end

     0   :  { %vm20_vm0 = vcmask 523264   ;;  %v261_v2 = vmov 0.0   ;;  %s328_s0 = inlined_call_operand.vmem [shape: bf16[32,64], index: 0, kind: input, shape index: {}]   ;;  %s329_s1 = inlined_call_operand.vmem [shape: bf16[64,64], index: 1, kind: input, shape index: {}]   ;;  %s330_s2 = inlined_call_operand.vmem [shape: bf16[1,64], index: 2, kind: input, shape index: {}]   ;;  %s331_s3 = inlined_call_operand.hbm [shape: bf16[32,64], index: 3, kind: output, shape index: {}]  }
   0x1   :  { %v231_v0 = vld [vmem:[%s329_s1] sm:$0xff]   ;;  %v232_v1 = vld [vmem:[%s329_s1 + $0x8] sm:$0xff]   ;;  %23 = vst.msk [vmem:[#allocation2 + $0x10] sm:$0xff] %vm20_vm0, %v261_v2  ;;  %21 = vst.msk [vmem:[#allocation2] sm:$0xff] %vm20_vm0, %v261_v2 }
   0x2   :  { %215 = vmatprep.subr.bf16.mxu0 %v231_v0  ;;  %22 = vst.msk [vmem:[#allocation2 + $0x8] sm:$0xff] %vm20_vm0, %v261_v2  ;;  %24 = vst.msk [vmem:[#allocation2 + $0x18] sm:$0xff] %vm20_vm0, %v261_v2  ;;  %v233_v3 = vld [vmem:[%s329_s1 + $0x10] sm:$0xff]   ;;  %v235_v4 = vld [vmem:[%s328_s0] sm:$0xff]  }
   0x3   :  { %216 = vmatpush3.bf16.msra.mxu0 %v231_v0  ;;  %223 = vmatprep.mubr.msk.bf16.mxu0 %vm20_vm0, %v235_v4 }
   0x4   :  { %217 = vmatprep.subr.bf16.mxu0 %v232_v1 }
   0x5   :  { %8 = vsyncpa [#allocation4], 0  ;;  %v234_v5 = vld [vmem:[%s329_s1 + $0x18] sm:$0xff]   ;;  %v236_v6 = vld [vmem:[%s328_s0 + $0x8] sm:$0xff]   ;;  %v148_v7 = vlaneseq  ;;  %vm172_vm1 = vcmask 519168   ;;  %s262_s0 = smov [#allocation3]  }
   0x6   :  { %v146_v13 = vld [vmem:[%s330_s2] sm:$0x1]  ;;  %s182_s1 = sshll.u32 %s262_s0, 4  ;;  %s183_s1 = int_to_ptr.vmem [resolvable:$true] %s182_s1 }
   0x7   :  { %218 = vmatpush3.bf16.msra.mxu0 %v232_v1  ;;  %v149_v10 = vshrl.u32 %v148_v7, 7  ;;  %v147_v21 = vunpack.c.l.bf16 %v146_v13  ;;  %s237_s2 = scalar_lea.vmem %s183_s1, 256  ;;  %p242_p1 = scmp.lt.s32.totalorder %s183_s1, %s183_s1 }
   0x8   :  { %219 = vmatprep.subr.bf16.mxu0 %v233_v3  ;;  %v27_v8 = vld [vmem:[#allocation2 + $0x10] sm:$0xff]  ;;  %v25_v9 = vld [vmem:[#allocation2] sm:$0xff]  ;;  %p238_p0 = scmp.ne.s32.totalorder %s183_s1, %s237_s2  ;;  %p243_p2 = scmp.lt.s32.totalorder %s237_s2, %s237_s2 }
   0x9   :  { %v28_v12 = vld [vmem:[#allocation2 + $0x18] sm:$0xff]  ;;  %v26_v16 = vld [vmem:[#allocation2 + $0x8] sm:$0xff]  ;;  %v150_v22 = vsub.s32 0, %v149_v10 }
   0xa   :  { %p244_p3 = por %p243_p2, %p242_p1 }
   0xb   :  { %220 = vmatpush3.bf16.msra.mxu0 %v233_v3  ;;  %v151_v24 = vrot.slane %v147_v21, %v150_v22 }
   0xc   :  { %221 = vmatprep.subr.bf16.mxu0 %v234_v5  ;;  %p245_p4 = pnand %p244_p3, %p238_p0 }
   0xf   :  { %222 = vmatpush3.bf16.msra.mxu0 %v234_v5 }
  0x12   :  { %224 = vmatmul.mubr.msk.bf16.vlgmr.msra.gmra.mrb[0].mxu0 %vm20_vm0, %v236_v6 }
  0xe5   :  { %v225_v11 = vpop.f32.mrb[0].mxu0 }
  0xe6   :  { %v133_v14 = vadd.f32 %v225_v11, %v27_v8  ;;  %v116_v15 = vpop.f32.mrb[1].mxu0 }
  0xe7   :  { %v131_v17 = vadd.f32 %v116_v15, %v25_v9  ;;  %v226_v18 = vpop.f32.mrb[2].mxu0 }
  0xe8   :  { %137 = vst.msk [vmem:[#allocation2 + $0x10] sm:$0xff] %vm20_vm0, %v133_v14  ;;  %v134_v19 = vadd.f32 %v226_v18, %v28_v12  ;;  %v119_v20 = vpop.f32.mrb[3].mxu0 }
  0xe9   :  { %135 = vst.msk [vmem:[#allocation2] sm:$0xff] %vm20_vm0, %v131_v17  ;;  %v132_v23 = vadd.f32 %v119_v20, %v26_v16 }
  0xea   :  { %138 = vst.msk [vmem:[#allocation2 + $0x18] sm:$0xff] %vm20_vm0, %v134_v19 }
  0xeb   :  { %136 = vst.msk [vmem:[#allocation2 + $0x8] sm:$0xff] %vm20_vm0, %v132_v23 }
  0xef   :  { %v144_v25 = vld [vmem:[#allocation2 + $0x10] sm:$0xff] }
  0xf0   :  { %v142_v26 = vld [vmem:[#allocation2] sm:$0xff]  ;;  %v154_v27 = vadd.f32 %v151_v24, %v144_v25 }
  0xf1   :  { %v145_v28 = vld [vmem:[#allocation2 + $0x18] sm:$0xff]  ;;  %v152_v29 = vadd.f32 %v151_v24, %v142_v26 }
  0xf2   :  { %v143_v30 = vld [vmem:[#allocation2 + $0x8] sm:$0xff]  ;;  %v155_v31 = vadd.f32 %v151_v24, %v145_v28  ;;  %v207_v32 = vpack.c.bf16 %v154_v27, %v154_v27 }
  0xf3   :  { %v153_v33 = vadd.f32 %v151_v24, %v143_v30  ;;  %v205_v34 = vpack.c.bf16 %v152_v29, %v152_v29 }
  0xf4   :  { %v208_v35 = vpack.c.bf16 %v155_v31, %v155_v31  ;;  %175 = vst.msk [vmem:[#allocation3 + $0x8] sm:$0xf] %vm172_vm1, %v207_v32 }
  0xf5   :  { %v206_v36 = vpack.c.bf16 %v153_v33, %v153_v33  ;;  %173 = vst.msk [vmem:[#allocation3] sm:$0xf] %vm172_vm1, %v205_v34 }
  0xf6   :  { %176 = vst.msk [vmem:[#allocation3 + $0xc] sm:$0xf] %vm172_vm1, %v208_v35 }
  0xf7   :  { %174 = vst.msk [vmem:[#allocation3 + $0x4] sm:$0xf] %vm172_vm1, %v206_v36 }
  0xf8   :  { %248 = shalt.err (!%p245_p4)
}
  0xf9   :  { %s249_s28 = scalar_lea.hbm %s331_s3, 256 }
  0xfa   :  { %p250_p5 = scmp.ne.s32.totalorder %s331_s3, %s249_s28  ;;  %p253_p6 = scmp.lt.u32.totalorder %s249_s28, %s331_s3 }
  0xfc   :  { %p255_p7 = pnand %p253_p6, %p250_p5 }
  0xfe   :  { %258 = shalt.err (!%p255_p7)
}
  0xff   :  { %s263_s6 = smov 64   ;;  %s264_s7 = smov 4  }
 0x100   :  { %188 = dma.vmem_to_hbm [thread:$0]  %s183_s1, 256, %s331_s3, [#allocation4], %s263_s6, %s263_s6, %s264_s7  }
 0x101   :  { %259 = dma.done.wait [#allocation4], 256  }
 0x102   :  { %260 = vsyncadd [#allocation4], 4294967040 }
 0x103   :  { %192 = vsyncpa [#allocation4], 1 }

// kernel: attention_forward.4
= control target key start
LH: loop header
LB: loop body
LE: loop exit
PB: predicated region body
PF: predicated region fallthrough
CT: control target
= control target key end

     0   :  { %s1297_s24 = smov 0   ;;  %s1299_s25 = smov 0   ;;  %s1398_s0 = inlined_call_operand.vmem [shape: bf16[2,4,16,16], index: 0, kind: input, shape index: {}]   ;;  %s1399_s1 = inlined_call_operand.vmem [shape: bf16[2,4,16,16], index: 1, kind: input, shape index: {}]   ;;  %s1400_s2 = inlined_call_operand.vmem [shape: bf16[2,4,16,16], index: 2, kind: input, shape index: {}]   ;;  %s1401_s3 = inlined_call_operand.vmem [shape: bf16[16,16], index: 3, kind: input, shape index: {}, may-alias: {3,5}]   ;;  %s1402_s4 = inlined_call_operand.vmem [shape: bf16[16,16], index: 4, kind: input, shape index: {}, may-alias: {4,6}]   ;;  %s1403_s5 = inlined_call_operand.vmem [shape: bf16[16,16], index: 5, kind: input, shape index: {}, may-alias: {3,5}]   ;;  %s1404_s6 = inlined_call_operand.vmem [shape: bf16[16,16], index: 6, kind: input, shape index: {}, may-alias: {4,6}]   ;;  %s1405_s7 = inlined_call_operand.vmem [shape: bf16[2,4,16,16], index: 7, kind: output, shape index: {}]  }
   0x1   :  { %s1301_s26 = smov 0   ;;  %s1303_s27 = smov 0  }
   0x2   :  { %s1305_s28 = smov 0  }
   0x3 LB: > { %s39_s29 = sadd.s32 1, %s1241_s26  ;;  %s43_s30 = sadd.s32 1, %s1245_s27  ;;  %s1249_s28 = sphi %s1305_s28, %s17_s28   ;;  %s1245_s27 = sphi %s1303_s27, %s1409_s27   ;;  %s1241_s26 = sphi %s1301_s26, %s1408_s26   ;;  %s1237_s25 = sphi %s1299_s25, %s1407_s25   ;;  %s1233_s24 = sphi %s1297_s24, %s1406_s24  }
   0x4   : > { %p41_p0 = scmp.ge.s32.totalorder %s39_s29, 4  ;;  %p1096_p1 = scmp.ge.s32.totalorder %s1249_s28, 1 }
   0x5   : > { %p370_p2 = scmp.lt.s32.totalorder %s1249_s28, 9 }
   0x6   : > { %s1411_s29 = smov (%p41_p0, %s39_s29), 0  ;;  %s1413_s30 = smov (!%p41_p0, %s43_s30), %s1245_s27 }
   0x7   : > { %p371_p3 = pnand %p1096_p1, %p370_p2  ;;  %p45_p4 = scmp.ge.s32.totalorder %s1413_s30, 2 }
   0x8   : > { %p465_p5 = scmp.lt.s32.totalorder (!%p371_p3), %s1237_s25, 1  ;;  %p467_p6 = scmp.lt.s32.totalorder (!%p371_p3), %s1233_s24, 3  ;;  %vm600_vm0 = vcmask (!%p371_p3), 130048   ;;  %v1252_v12 = vmov (!%p371_p3), 0.0   ;;  %vm1253_vm1 = vmmov (!%p371_p3), 0   ;;  %vm571_vm2 = vcmask (!%p371_p3), 64512  }
   0x9   : > { %s1415_s30 = smov (%p45_p4, %s1413_s30), 0  ;;  %374 = sbr.rel (%p371_p3) target bundleno = 966 (0x3c6), region = 48 }
   0xa   : > { %s1251_s18 = smov (!%p371_p3), 120   ;;  %607 = vst.msk [vmem:[#allocation5] sm:$0xff] (!%p371_p3), %vm600_vm0, %v1252_v12  ;;  %608 = vst.msk [vmem:[#allocation5 + $0x8] sm:$0xff] (!%p371_p3), %vm600_vm0, %v1252_v12  ;;  %1134 = vmatprep.subr.bf16.mxu0 (!%p371_p3), %v1252_v12  ;;  %1136 = vmatprep.mubr.msk.bf16.mxu0 (!%p371_p3), %vm1253_vm1, %v1252_v12  ;;  %s1254_s19 = smov (!%p371_p3), 8   ;;  %v1196_v15 = vld [vmem:[%s1404_s6] sm:$0xff] (!%p371_p3)   ;;  %vm602_vm3 = vcmask (!%p371_p3), 7168  }
   0xb   : > { %1140 = vmatprep.subr.bf16.mxu1 (!%p371_p3), %v1252_v12  ;;  %1142 = vmatprep.mubr.msk.bf16.mxu1 (!%p371_p3), %vm1253_vm1, %v1252_v12  ;;  %v1197_v16 = vld [vmem:[%s1402_s4] sm:$0xff] (!%p371_p3)   ;;  %v1255_v43 = vmov (!%p371_p3), -inf   ;;  %605 = vst.msk [vmem:[#allocation4] sm:$0xff] (!%p371_p3), %vm602_vm3, %v1252_v12  ;;  %606 = vst.msk [vmem:[#allocation4 + $0x8] sm:$0xff] (!%p371_p3), %vm602_vm3, %v1252_v12  ;;  %v1256_v52 = vmov (!%p371_p3), 0   ;;  %vm859_vm4 = vcmask (!%p371_p3), 125952  }
   0xc   : > { %v611_v17 = vld [vmem:[%s1403_s5] sm:$0xf] (!%p371_p3)  ;;  %v612_v18 = vld [vmem:[%s1403_s5 + $0x4] sm:$0xf] (!%p371_p3)  ;;  %603 = vst.msk [vmem:[#allocation3] sm:$0xff] (!%p371_p3), %vm602_vm3, %v1255_v43  ;;  %604 = vst.msk [vmem:[#allocation3 + $0x8] sm:$0xff] (!%p371_p3), %vm602_vm3, %v1255_v43  ;;  %1192 = vset.pattern.permute.xlu0 (!%p371_p3), %v1256_v52  ;;  %1193 = vset.pattern.permute.xlu1 (!%p371_p3), %v1256_v52 }
   0xd   : > { %v551_v19 = vld [vmem:[%s1401_s3] sm:$0xf] (!%p371_p3)  ;;  %v552_v20 = vld [vmem:[%s1401_s3 + $0x4] sm:$0xf] (!%p371_p3) }
  0x10   : > { %s1417_s25 = smov (!%p465_p5, %s1237_s25), 1  ;;  %s1419_s24 = smov (!%p467_p6, %s1233_s24), 3 }
  0x11   : > { %s1098_s8 = sshll.u32 %s1417_s25, 3  ;;  %s1097_s9 = sshll.u32 %s1419_s24, 1 }
  0x12   : > { %s474_s10 = sadd.s32 %s1098_s8, %s1097_s9 }
  0x13   : > { %s1327_s11 = sshll.u32 %s474_s10, 2  ;;  %v710_v53 = vld [vmem:[#allocation3] sm:$0xff]  ;;  %v711_v55 = vld [vmem:[#allocation3 + $0x8] sm:$0xff] }
  0x14   : > { %s490_s14 = scalar_lea.vmem %s1399_s1, %s1327_s11  ;;  %s476_s17 = scalar_lea.vmem %s1398_s0, %s1327_s11 }
  0x15   : > { %v609_v0 = vld [vmem:[%s490_s14] sm:$0xf]  ;;  %v610_v1 = vld [vmem:[%s490_s14 + $0x4] sm:$0xf]  ;;  %s542_s20 = scalar_lea.vmem %s1405_s7, %s1327_s11 }
  0x16   : > { %v549_v2 = vld [vmem:[%s476_s17] sm:$0xf]  ;;  %v615_v3 = vsub.bf16 0, %v609_v0  ;;  %v616_v4 = vsub.bf16 0, %v610_v1  ;;  %v550_v5 = vld [vmem:[%s476_s17 + $0x4] sm:$0xf]  ;;  %v1116_v10 = vcombine.low %v609_v0, %v610_v1  ;;  %v613_v26 = vmul.bf16 %v611_v17, %v609_v0  ;;  %s504_s17 = scalar_lea.vmem %s1400_s2, %s1327_s11 }
  0x17   : > { %v555_v6 = vsub.bf16 0, %v549_v2  ;;  %v556_v7 = vsub.bf16 0, %v550_v5  ;;  %v1110_v11 = vcombine.low %v549_v2, %v550_v5  ;;  %v614_v27 = vmul.bf16 %v612_v18, %v610_v1  ;;  %v1198_v61 = vld [vmem:[%s504_s17] sm:$0xff]  }
  0x18   : > { %v1115_v8 = vcombine.low %v615_v3, %v616_v4  ;;  %v554_v28 = vmul.bf16 %v552_v20, %v550_v5  ;;  %v553_v29 = vmul.bf16 %v551_v19, %v549_v2  ;;  %1141 = vmatpush3.bf16.msra.mxu1 %v1198_v61 }
  0x19   : > { %v1109_v9 = vcombine.low %v555_v6, %v556_v7 }
  0x1a   : > { %622 = vrot.lane.b32.xlu1 %v1115_v8, %s1251_s18 }
  0x1b   : > { %562 = vrot.lane.b32.xlu0 %v1109_v9, %s1251_s18 }
  0x1e   : > { %629 = vrot.lane.b32.xlu1 %v1116_v10, %s1254_s19 }
  0x1f   : > { %569 = vrot.lane.b32.xlu0 %v1110_v11, %s1254_s19 }
  0x8c   : > { %v623_v13 = vpop.permute.xlu1 %622 }
  0x8d   : > { %v563_v14 = vpop.permute.xlu0 %562 }
  0x90   : > { %v630_v21 = vpop.permute.xlu1 %629 }
  0x91   : > { %v634_v22 = vsel %vm571_vm2, %v623_v13, %v630_v21  ;;  %v570_v23 = vpop.permute.xlu0 %569  ;;  %v742_v13 = vld [vmem:[#allocation4] sm:$0xff] }
  0x92   : > { %v644_v24 = vmul.bf16 %v1196_v15, %v634_v22  ;;  %v574_v25 = vsel %vm571_vm2, %v563_v14, %v570_v23  ;;  %v743_v14 = vld [vmem:[#allocation4 + $0x8] sm:$0xff] }
  0x93   : > { %v584_v30 = vmul.bf16 %v1197_v16, %v574_v25  ;;  %v757_v25 = vld [vmem:[#allocation5] sm:$0xff] }
  0x94   : > { %v1118_v31 = vcombine.low %v644_v24, %v644_v24  ;;  %v1119_v32 = vcombine.high %v644_v24, %v644_v24 }
  0x95   : > { %v1112_v33 = vcombine.low %v584_v30, %v584_v30  ;;  %v1113_v34 = vcombine.high %v584_v30, %v584_v30 }
  0x96   : > { %v652_v35 = vadd.bf16 %v1118_v31, %v613_v26  ;;  %v653_v36 = vadd.bf16 %v1119_v32, %v614_v27  ;;  %v758_v27 = vld [vmem:[#allocation5 + $0x8] sm:$0xff] }
  0x97   : > { %v592_v37 = vadd.bf16 %v1112_v33, %v553_v29  ;;  %v593_v38 = vadd.bf16 %v1113_v34, %v554_v28 }
  0x98   : > { %v1120_v39 = vcombine.low %v652_v35, %v653_v36 }
  0x99   : > { %v1114_v40 = vcombine.low %v592_v37, %v593_v38 }
  0x9a   : > { %v665_v41 = vsel %vm600_vm0, %v1120_v39, 0 }
  0x9b   : > { %601 = vst.msk [vmem:[#allocation2] sm:$0xff] %vm600_vm0, %v1114_v40  ;;  %1135 = vmatpush3.bf16.xpose.msra.mxu0 %v665_v41 }
  0xa2   : > { %v654_v42 = vld [vmem:[#allocation2] sm:$0xff] }
  0xa3   : > { %1137 = vmatmul.mubr.msk.bf16.vlgmr.msra.gmra.mrb[0].mxu0 %vm600_vm0, %v654_v42 }
 0x176   : > { %v701_v44 = vpop.f32.mrb[0].mxu0 }
 0x177   : > { %v708_v45 = vmul.f32 0.25, %v701_v44  ;;  %v1138_v46 = vpop.f32.mrb[1].mxu0 }
 0x178   : > { %v704_v47 = vpop.f32.mrb[2].mxu0 }
 0x179   : > { %v709_v48 = vmul.f32 0.25, %v704_v47  ;;  %v1139_v49 = vpop.f32.mrb[3].mxu0  ;;  %v712_v50 = vsel %vm600_vm0, %v708_v45, -inf }
 0x17a   : > { %713 = vmax.xlane.f32.xlu0 %v712_v50 }
 0x17b   : > { %v715_v51 = vsel %vm600_vm0, %v709_v48, -inf }
 0x17c   : > { %716 = vmax.xlane.f32.xlu1 %v715_v51 }
 0x207   : > { %v714_v54 = vpop.xlane.xlu0 %713 }
 0x208   : > { %v718_v56 = vmax.f32 %v710_v53, %v714_v54 }
 0x209   : > { %v717_v57 = vpop.xlane.xlu1 %716 }
 0x20a   : > { %v720_v58 = vsub.f32 %v710_v53, %v718_v56  ;;  %828 = vst.msk [vmem:[#allocation3] sm:$0xff] %vm602_vm3, %v718_v56  ;;  %v719_v59 = vmax.f32 %v711_v55, %v717_v57  ;;  %728 = vperm.xlu0 %1192, %v718_v56  }
 0x20c   : > { %v721_v60 = vsub.f32 %v711_v55, %v719_v59  ;;  %829 = vst.msk [vmem:[#allocation3 + $0x8] sm:$0xff] %vm602_vm3, %v719_v59  ;;  %733 = vperm.xlu1 %1193, %v719_v59   ;;  %v722_v9 = vmul.f32 1.442695, %v720_v58 }
 0x20e   : > { %v724_v10 = vmul.f32 1.442695, %v721_v60 }
 0x289   : > { %v729_v62 = vpop.permute.xlu0 %728 }
 0x28a   : > { %v736_v63 = vsub.f32 %v708_v45, %v729_v62 }
 0x28b   : > { %v734_v0 = vpop.permute.xlu1 %733 }
 0x28c   : > { %v738_v1 = vmul.f32 1.442695, %v736_v63  ;;  %v737_v2 = vsub.f32 %v709_v48, %v734_v0 }
 0x28e   : > { %1199 = vpow2.f32 %v738_v1  ;;  %v740_v3 = vmul.f32 1.442695, %v737_v2 }
 0x290   : > { %1201 = vpow2.f32 %v740_v3 }
 0x291   : > { %1203 = vpow2.f32 %v722_v9 }
 0x292   : > { %1205 = vpow2.f32 %v724_v10 }
 0x298   : > { %v1200_v4 = vpop.eup %1199 }
 0x299   : > { %v746_v5 = vsel %vm600_vm0, %v1200_v4, 0.0 }
 0x29a   : > { %v1202_v6 = vpop.eup %1201  ;;  %747 = vadd.xlane.f32.xlu1 %v746_v5 }
 0x29b   : > { %v749_v7 = vsel %vm600_vm0, %v1202_v6, 0.0  ;;  %v771_v8 = vpack.c.bf16 %v1202_v6, %v1200_v4  ;;  %v1204_v11 = vpop.eup %1203 }
 0x29c   : > { %750 = vadd.xlane.f32.xlu0 %v749_v7  ;;  %v1206_v12 = vpop.eup %1205  ;;  %v744_v15 = vmul.f32 %v1204_v11, %v742_v13 }
 0x29d   : > { %1143 = vmatmul.mubr.msk.bf16.vlgmr.msra.gmra.mrb[0].mxu1 %vm600_vm0, %v771_v8  ;;  %v745_v18 = vmul.f32 %v1206_v12, %v743_v14 }
 0x2ab   : > { %761 = vperm.xlu1 %1193, %v1204_v11  }
 0x2b2   : > { %766 = vperm.xlu0 %1192, %v1206_v12  }
 0x327   : > { %v748_v16 = vpop.xlane.xlu1 %747 }
 0x328   : > { %v752_v17 = vadd.f32 %v748_v16, %v744_v15 }
 0x329   : > { %v751_v19 = vpop.xlane.xlu0 %750 }
 0x32a   : > { %755 = vst.msk [vmem:[#allocation4] sm:$0xff] %vm602_vm3, %v752_v17  ;;  %v753_v20 = vadd.f32 %v751_v19, %v745_v18 }
 0x32b   : > { %v762_v26 = vpop.permute.xlu1 %761 }
 0x32c   : > { %756 = vst.msk [vmem:[#allocation4 + $0x8] sm:$0xff] %vm602_vm3, %v753_v20  ;;  %v769_v29 = vmul.f32 %v762_v26, %v757_v25 }
 0x331   : > { %v835_v21 = vld [vmem:[#allocation4] sm:$0xff]  ;;  %v767_v28 = vpop.permute.xlu0 %766 }
 0x332   : > { %1207 = vrcp.f32 %v835_v21  ;;  %v770_v31 = vmul.f32 %v767_v28, %v758_v27 }
 0x333   : > { %v836_v22 = vld [vmem:[#allocation4 + $0x8] sm:$0xff] }
 0x334   : > { %1209 = vrcp.f32 %v836_v22 }
 0x33c   : > { %v1208_v23 = vpop.eup %1207 }
 0x33d   : > { %841 = vperm.xlu1 %1193, %v1208_v23  }
 0x33e   : > { %v1210_v24 = vpop.eup %1209 }
 0x341   : > { %846 = vperm.xlu1 %1193, %v1210_v24  }
 0x370   : > { %v817_v30 = vpop.f32.mrb[0].mxu1 }
 0x371   : > { %v824_v32 = vadd.f32 %v817_v30, %v769_v29  ;;  %v1144_v33 = vpop.f32.mrb[1].mxu1 }
 0x372   : > { %v820_v34 = vpop.f32.mrb[2].mxu1 }
 0x373   : > { %826 = vst.msk [vmem:[#allocation5] sm:$0xff] %vm600_vm0, %v824_v32  ;;  %v825_v35 = vadd.f32 %v820_v34, %v770_v31  ;;  %v1145_v36 = vpop.f32.mrb[3].mxu1 }
 0x375   : > { %827 = vst.msk [vmem:[#allocation5 + $0x8] sm:$0xff] %vm600_vm0, %v825_v35 }
 0x37a   : > { %v833_v37 = vld [vmem:[#allocation5] sm:$0xff] }
 0x37c   : > { %v834_v41 = vld [vmem:[#allocation5 + $0x8] sm:$0xff] }
 0x3bc   : > { %v842_v38 = vpop.permute.xlu1 %841 }
 0x3bd   : > { %v849_v39 = vmul.f32 %v842_v38, %v833_v37 }
 0x3bf   : > { %v1128_v40 = vpack.c.bf16 %v849_v39, %v849_v39 }
 0x3c0   : > { %v847_v42 = vpop.permute.xlu1 %846 }
 0x3c1   : > { %860 = vst.msk [vmem:[%s542_s20] sm:$0xf] %vm859_vm4, %v1128_v40  ;;  %v850_v43 = vmul.f32 %v847_v42, %v834_v41 }
 0x3c3   : > { %v1129_v44 = vpack.c.bf16 %v850_v43, %v850_v43 }
 0x3c5   : > { %861 = vst.msk [vmem:[%s542_s20 + $0x4] sm:$0xf] %vm859_vm4, %v1129_v44 }
 0x3c6 PF: > { %s17_s28 = sadd.s32 1, %s1249_s28   ;;  %s1406_s24 = smov %s1241_s26 }
 0x3c7   : > { %p14_p7 = scmp.ge.s32.totalorder %s17_s28, 10   ;;  %s1407_s25 = smov %s1245_s27 }
 0x3c8   : > { %s1408_s26 = smov %s1411_s29  ;;  %s1409_s27 = smov %s1415_s30 }
 0x3c9   :  { %16 = sbr.rel (!%p14_p7) target bundleno = 3 (0x3), region = 104 }

</bundles_post_ra>
